<compile_context>
chip_gen: v6e
topology: v6e:2x2x1
jax: 0.10.0
libtpu: 0.0.40
codegen_flags: <defaults>
</compile_context>

<pallas_src>
import jax
import jax.numpy as jnp
from jax.experimental import pallas as pl
from jax.experimental.pallas import tpu as pltpu


def _transition_kernel(x_ref, scale_ref, bias_ref, w_ref, o_ref):
    # x_ref:     (NB, TH, W//2, 2*Cin)  input dtype (f32 or bf16), NHWC view
    #            with adjacent column pairs pre-packed on the lane dim.
    # scale_ref: (1, 2*Cin)  folded BN scale (gamma / sqrt(var+eps)), doubled.
    # bias_ref:  (1, 2*Cin)  folded BN bias  (beta - mean*scale), doubled.
    # w_ref:     (2*Cin, Cout) bf16  [wt; wt] with wt = 0.25 * conv_w^T
    #            (column-pair pool + 1/4 average factor folded into the matmul).
    # o_ref:     (NB, TH//2, W//2, Cout)  out dtype (bf16 by default).
    x = x_ref[...]                                     # keep caller dtype
    nb, th, wh, c2 = x.shape
    r = th // 2
    cout = w_ref.shape[1]

    # BatchNorm (eval-mode folded affine) + ReLU on the VPU, in the input dtype.
    y = jnp.maximum(x * scale_ref[...] + bias_ref[...], 0)

    # 2x2 pool, row half: pair-add consecutive rows.  Major-dim reshapes only
    # (no sublane/lane relayout); row pairs never straddle images (TH even).
    y = y.reshape(nb * r, 2, wh, c2)
    y = y[:, 0] + y[:, 1]                              # (nb*r, wh, 2*Cin)

    # TODO(synk): dropout(p=0.2) is identity in eval mode; training mode would
    # need pltpu.prng_seed + pltpu.stateful_bernoulli on the conv output.

    # 2x2 pool column half + 1x1 conv, fused as one MXU matmul: the doubled
    # channel dim is the contraction (K) dim, weight is stacked [wt; wt].
    # bf16 operands, f32 accumulation (native MXU rate on v6e/v7x).
    z = jnp.dot(y.reshape(nb * r * wh, c2).astype(jnp.bfloat16),
                w_ref[...],
                preferred_element_type=jnp.float32)    # (nb*r*wh, Cout)

    o_ref[...] = z.reshape(nb, r, wh, cout).astype(o_ref.dtype)


def _pick_block(N, H, W, Cin, max_block_bytes=4 << 20, target_steps=8):
    """Pick (images_per_block NB, rows_per_block TH).

    Maximizes the input slab within a 4 MiB f32-equivalent budget (so the
    double-buffered inputs + outputs + in-kernel f32 temporaries stay well
    under the 32 MiB scoped-VMEM limit we request, on v5e/v6e/v7x alike),
    while keeping the grid at >= min(8, N*H/2) steps so both v7x TensorCores
    get work and per-step overhead is amortized.
    """
    max_elems = max_block_bytes // 4          # budget counted in f32 elements
    need_steps = min(target_steps, N * (H // 2))
    best = None
    for nb in range(1, N + 1):
        if N % nb:
            continue
        for th in range(2, H + 1, 2):
            if H % th:
                continue
            elems = nb * th * W * Cin
            steps = (N // nb) * (H // th)
            if elems > max_elems or steps < need_steps:
                continue
            key = (elems, th, nb)
            if best is None or key > best[0]:
                best = (key, nb, th)
    if best is None:
        # Even a single 2-row slab exceeds the budget (huge W*Cin); fall back
        # to the smallest block and rely on the raised vmem_limit_bytes.
        return 1, 2
    return best[1], best[2]


def transition_forward_nhwc(x_nhwc, gamma, beta, running_mean, running_var,
                            conv_w, eps=1.1e-5, out_dtype=None,
                            images_per_block=None, rows_per_block=None):
    """Eval-mode Transition forward, NHWC in -> NHWC out (preferred entry)."""
    N, H, W, Cin = x_nhwc.shape
    Cout = conv_w.shape[0]
    assert H % 2 == 0 and W % 2 == 0
    if out_dtype is None:
        # bf16 output halves writeback bytes; pass jnp.float32 for strict parity.
        out_dtype = jnp.bfloat16

    # Fold BatchNorm (eval: running stats) into a per-channel affine, in f32,
    # then double along channels to match the column-paired input view below.
    # The folded params are cast to the input dtype so the elementwise math
    # stays in that dtype (f32 for f32 callers; bf16 VALU on v6e/v7x).
    scale = (gamma / jnp.sqrt(running_var + eps)).astype(jnp.float32)
    bias = (beta - running_mean * scale).astype(jnp.float32)
    p_dtype = x_nhwc.dtype
    scale2 = jnp.concatenate([scale, scale]).reshape(1, 2 * Cin).astype(p_dtype)
    bias2 = jnp.concatenate([bias, bias]).reshape(1, 2 * Cin).astype(p_dtype)

    # 1x1 conv weight^T with the 2x2 average-pool factor 1/4 folded in, stacked
    # twice along the input-channel dim so the column-pair pool rides the
    # matmul's K dimension.  bf16 feeds the MXU at native rate.
    wt = conv_w.reshape(Cout, Cin).T.astype(jnp.float32) * 0.25
    wt2 = jnp.concatenate([wt, wt], axis=0).astype(jnp.bfloat16)   # (2*Cin, Cout)

    # Free, contiguous NHWC view: adjacent column pairs packed on the lane dim.
    Wh, C2 = W // 2, 2 * Cin
    xv = x_nhwc.reshape(N, H, Wh, C2)

    if images_per_block is None and rows_per_block is None:
        NB, TH = _pick_block(N, H, W, Cin)
    else:
        NB = images_per_block if images_per_block is not None else 1
        TH = rows_per_block if rows_per_block is not None else H
    assert N % NB == 0 and H % TH == 0 and TH % 2 == 0

    out = pl.pallas_call(
        _transition_kernel,
        out_shape=jax.ShapeDtypeStruct((N, H // 2, Wh, Cout), out_dtype),
        grid_spec=pltpu.PrefetchScalarGridSpec(
            num_scalar_prefetch=0,
            grid=(N // NB, H // TH),
            in_specs=[
                # NOTE: if a profile ever shows exposed DMA at step boundaries,
                # pipeline_mode=pl.Buffered(3) on this spec is a cheap knob.
                pl.BlockSpec((NB, TH, Wh, C2), lambda n, h: (n, h, 0, 0)),
                pl.BlockSpec((1, C2), lambda n, h: (0, 0)),
                pl.BlockSpec((1, C2), lambda n, h: (0, 0)),
                pl.BlockSpec((C2, Cout), lambda n, h: (0, 0)),
            ],
            out_specs=pl.BlockSpec((NB, TH // 2, Wh, Cout),
                                   lambda n, h: (n, h, 0, 0)),
        ),
        compiler_params=pltpu.CompilerParams(
            dimension_semantics=("parallel", "parallel"),
            # Raise v5e's 16 MiB default; comfortably below v7x's 64 MiB
            # physical VMEM.  Worst-case usage with a 4 MiB f32 input slab is
            # ~2x4 (in, double-buffered) + ~1 (out) + ~8 (f32 temps) ~= 20 MiB.
            vmem_limit_bytes=32 * 1024 * 1024),
    )(xv, scale2, bias2, wt2)
    return out


def transition_forward(x_nchw, gamma, beta, running_mean, running_var, conv_w,
                       eps=1.1e-5, out_dtype=None,
                       images_per_block=None, rows_per_block=None):
    """PyTorch-layout wrapper: NCHW in -> NCHW out (matches the nn.Module)."""
    # TODO(synk): these two transposes are separate memory-bound XLA ops;
    # callers that can produce/consume NHWC should use transition_forward_nhwc.
    x_nhwc = jnp.transpose(x_nchw, (0, 2, 3, 1))
    out_nhwc = transition_forward_nhwc(
        x_nhwc, gamma, beta, running_mean, running_var, conv_w, eps=eps,
        out_dtype=out_dtype, images_per_block=images_per_block,
        rows_per_block=rows_per_block)
    return jnp.transpose(out_nhwc, (0, 3, 1, 2))


def _reference_forward(x_nchw, gamma, beta, running_mean, running_var, conv_w,
                       eps=1.1e-5):
    """Pure-JAX f32 reference (eval mode) for correctness checking."""
    xn = (x_nchw - running_mean[None, :, None, None]) / jnp.sqrt(
        running_var[None, :, None, None] + eps)
    xn = xn * gamma[None, :, None, None] + beta[None, :, None, None]
    y = jnp.maximum(xn, 0.0)
    out = jnp.einsum('nchw,oc->nohw', y, conv_w.reshape(conv_w.shape[0], -1))
    N, C, H, W = out.shape
    out = out.reshape(N, C, H // 2, 2, W // 2, 2).mean(axis=(3, 5))
    return out


if __name__ == "__main__":
    key = jax.random.PRNGKey(0)
    k_x, k_g, k_b, k_w = jax.random.split(key, 4)

    N, Cin, H, W = 2, 32, 16, 16
    Cout = 16

    x = jax.random.normal(k_x, (N, Cin, H, W), dtype=jnp.float32)

    # Deterministic synthetic parameters (shapes match nn.BatchNorm2d / nn.Conv2d).
    gamma = 1.0 + 0.1 * jax.random.normal(k_g, (Cin,), dtype=jnp.float32)
    beta = 0.1 * jax.random.normal(k_b, (Cin,), dtype=jnp.float32)
    running_mean = jnp.zeros((Cin,), jnp.float32)   # PyTorch default
    running_var = jnp.ones((Cin,), jnp.float32)     # PyTorch default
    conv_w = (jax.random.normal(k_w, (Cout, Cin, 1, 1), dtype=jnp.float32)
              * (1.0 / jnp.sqrt(Cin)))

    ref = _reference_forward(x, gamma, beta, running_mean, running_var, conv_w)

    # Default path: auto-picked (NB, TH) blocking (>= 8 grid steps), bf16 out.
    out = transition_forward(x, gamma, beta, running_mean, running_var, conv_w)
    out = jax.block_until_ready(out)
    assert out.shape == (N, Cout, H // 2, W // 2), out.shape
    assert out.dtype == jnp.bfloat16, out.dtype
    err = float(jnp.max(jnp.abs(out.astype(jnp.float32) - ref)))
    # Tolerance covers bf16 MXU operands (f32 accum) + bf16 output rounding.
    assert err < 5e-2, err

    # Explicit multi-block tiling along H + strict f32 output path.
    out32 = transition_forward(x, gamma, beta, running_mean, running_var,
                               conv_w, out_dtype=jnp.float32,
                               images_per_block=1, rows_per_block=4)
    out32 = jax.block_until_ready(out32)
    assert out32.dtype == jnp.float32
    err32 = float(jnp.max(jnp.abs(out32 - ref)))
    assert err32 < 5e-2, err32

    print("KERNEL_OK")
</pallas_src>

<mosaic_0001>
module attributes {stable_mosaic.version = 11 : i64} {
  func.func @_transition_kernel(%arg0: i32, %arg1: i32, %arg2: memref<1x4x8x64xf32, #tpu.memory_space<vmem>>, %arg3: memref<1x64xf32, #tpu.memory_space<vmem>>, %arg4: memref<1x64xf32, #tpu.memory_space<vmem>>, %arg5: memref<64x16xbf16, #tpu.memory_space<vmem>>, %arg6: memref<1x2x8x16xbf16, #tpu.memory_space<vmem>>) attributes {dimension_semantics = [#tpu.dimension_semantics<parallel>, #tpu.dimension_semantics<parallel>], iteration_bounds = array<i64: 2, 4>, scalar_prefetch = 0 : i64, scratch_operands = 0 : i64, tpu.core_type = #tpu.core_type<tc>, window_params = [{transform_indices = @transform_0, window_bounds = array<i64: 1, 4, 8, 64>}, {pipeline_mode = #tpu.pipeline_mode<synchronous>, transform_indices = @transform_1, window_bounds = array<i64: 1, 64>}, {pipeline_mode = #tpu.pipeline_mode<synchronous>, transform_indices = @transform_2, window_bounds = array<i64: 1, 64>}, {pipeline_mode = #tpu.pipeline_mode<synchronous>, transform_indices = @transform_3, window_bounds = array<i64: 64, 16>}, {transform_indices = @transform_4, window_bounds = array<i64: 1, 2, 8, 16>}]} {
    %c0 = arith.constant 0 : index
    %c0_0 = arith.constant 0 : index
    %c0_1 = arith.constant 0 : index
    %c0_2 = arith.constant 0 : index
    %0 = vector.load %arg2[%c0, %c0_0, %c0_1, %c0_2] : memref<1x4x8x64xf32, #tpu.memory_space<vmem>>, vector<1x4x8x64xf32>
    %c0_3 = arith.constant 0 : index
    %c0_4 = arith.constant 0 : index
    %1 = vector.load %arg3[%c0_3, %c0_4] : memref<1x64xf32, #tpu.memory_space<vmem>>, vector<1x64xf32>
    %2 = vector.shape_cast %1 : vector<1x64xf32> to vector<1x1x1x64xf32>
    %3 = vector.broadcast %2 : vector<1x1x1x64xf32> to vector<1x4x8x64xf32>
    %4 = arith.mulf %0, %3 : vector<1x4x8x64xf32>
    %c0_5 = arith.constant 0 : index
    %c0_6 = arith.constant 0 : index
    %5 = vector.load %arg4[%c0_5, %c0_6] : memref<1x64xf32, #tpu.memory_space<vmem>>, vector<1x64xf32>
    %6 = vector.shape_cast %5 : vector<1x64xf32> to vector<1x1x1x64xf32>
    %7 = vector.broadcast %6 : vector<1x1x1x64xf32> to vector<1x4x8x64xf32>
    %8 = arith.addf %4, %7 : vector<1x4x8x64xf32>
    %cst = arith.constant 0.000000e+00 : f32
    %9 = vector.broadcast %cst : f32 to vector<1x4x8x64xf32>
    %10 = arith.maximumf %8, %9 : vector<1x4x8x64xf32>
    %11 = vector.shape_cast %10 : vector<1x4x8x64xf32> to vector<2x2x8x64xf32>
    %12 = vector.extract_strided_slice %11 {offsets = [0, 0, 0, 0], sizes = [2, 1, 8, 64], strides = [1, 1, 1, 1]} : vector<2x2x8x64xf32> to vector<2x1x8x64xf32>
    %13 = vector.shape_cast %12 : vector<2x1x8x64xf32> to vector<2x8x64xf32>
    %14 = vector.extract_strided_slice %11 {offsets = [0, 1, 0, 0], sizes = [2, 1, 8, 64], strides = [1, 1, 1, 1]} : vector<2x2x8x64xf32> to vector<2x1x8x64xf32>
    %15 = vector.shape_cast %14 : vector<2x1x8x64xf32> to vector<2x8x64xf32>
    %16 = arith.addf %13, %15 : vector<2x8x64xf32>
    %17 = vector.shape_cast %16 : vector<2x8x64xf32> to vector<16x64xf32>
    %18 = arith.truncf %17 : vector<16x64xf32> to vector<16x64xbf16>
    %c0_7 = arith.constant 0 : index
    %c0_8 = arith.constant 0 : index
    %19 = vector.load %arg5[%c0_7, %c0_8] : memref<64x16xbf16, #tpu.memory_space<vmem>>, vector<64x16xbf16>
    %cst_9 = arith.constant dense<0.000000e+00> : vector<16x16xf32>
    %20 = tpu.matmul %18, %19, %cst_9 {dimension_numbers = #tpu.dot_dimension_numbers<[1], [0], [0], [1], [0, 0, 1, 1], [], []>} : vector<16x64xbf16>, vector<64x16xbf16>, vector<16x16xf32> -> vector<16x16xf32>
    %21 = vector.shape_cast %20 : vector<16x16xf32> to vector<1x2x8x16xf32>
    %22 = arith.truncf %21 : vector<1x2x8x16xf32> to vector<1x2x8x16xbf16>
    %c0_10 = arith.constant 0 : index
    %c0_11 = arith.constant 0 : index
    %c0_12 = arith.constant 0 : index
    %c0_13 = arith.constant 0 : index
    %23 = vector.load %arg6[%c0_10, %c0_11, %c0_12, %c0_13] : memref<1x2x8x16xbf16, #tpu.memory_space<vmem>>, vector<1x2x8x16xbf16>
    tpu.vector_store %arg6[%c0_10, %c0_11, %c0_12, %c0_13], %22 {strides = array<i32>} : memref<1x2x8x16xbf16, #tpu.memory_space<vmem>>, vector<1x2x8x16xbf16>,
    return
  }
  func.func @transform_0(%arg0: i32, %arg1: i32) -> (i32, i32, i32, i32) {
    %c0_i32 = arith.constant 0 : i32
    %c0_i32_0 = arith.constant 0 : i32
    %c0_i32_1 = arith.constant 0 : i32
    return %arg0, %arg1, %c0_i32, %c0_i32_0 : i32, i32, i32, i32
  }
  func.func @transform_1(%arg0: i32, %arg1: i32) -> (i32, i32) {
    %c0_i32 = arith.constant 0 : i32
    %c0_i32_0 = arith.constant 0 : i32
    %c0_i32_1 = arith.constant 0 : i32
    return %c0_i32, %c0_i32_0 : i32, i32
  }
  func.func @transform_2(%arg0: i32, %arg1: i32) -> (i32, i32) {
    %c0_i32 = arith.constant 0 : i32
    %c0_i32_0 = arith.constant 0 : i32
    %c0_i32_1 = arith.constant 0 : i32
    return %c0_i32, %c0_i32_0 : i32, i32
  }
  func.func @transform_3(%arg0: i32, %arg1: i32) -> (i32, i32) {
    %c0_i32 = arith.constant 0 : i32
    %c0_i32_0 = arith.constant 0 : i32
    %c0_i32_1 = arith.constant 0 : i32
    return %c0_i32, %c0_i32_0 : i32, i32
  }
  func.func @transform_4(%arg0: i32, %arg1: i32) -> (i32, i32, i32, i32) {
    %c0_i32 = arith.constant 0 : i32
    %c0_i32_0 = arith.constant 0 : i32
    %c0_i32_1 = arith.constant 0 : i32
    return %arg0, %arg1, %c0_i32, %c0_i32_0 : i32, i32, i32, i32
  }
}

</mosaic_0001>

<bundles_post_ra>
// kernel: tpu_custom_call.1
= control target key start
LH: loop header
LB: loop body
LE: loop exit
PB: predicated region body
PF: predicated region fallthrough
CT: control target
= control target key end

     0   :  { %9 = vsyncpa [#allocation3], 0  ;;  %s931_s0 = inlined_call_operand.hbm [shape: f32[2,16,8,64], index: 0, kind: input, shape index: {}]   ;;  %s932_s1 = inlined_call_operand.vmem [shape: f32[1,64], index: 1, kind: input, shape index: {}]   ;;  %s933_s2 = inlined_call_operand.vmem [shape: f32[1,64], index: 2, kind: input, shape index: {}]   ;;  %s934_s3 = inlined_call_operand.vmem [shape: bf16[64,16], index: 3, kind: input, shape index: {}]   ;;  %s935_s4 = inlined_call_operand.hbm [shape: bf16[2,8,8,16], index: 4, kind: output, shape index: {}]  }
   0x1   :  { %11 = vsyncpa [#allocation3 + $0x1], 0 }
   0x2   :  { %12 = vsyncpa [#allocation4], 0 }
   0x3   :  { %14 = vsyncpa [#allocation4 + $0x1], 0  ;;  %s746_s15 = smov 0   ;;  %s748_s16 = smov 0  }
   0x4   :  { %s750_s17 = smov 0   ;;  %s752_s18 = smov 0  }
   0x5   :  { %s754_s19 = smov 0   ;;  %s756_s20 = smov 0  }
   0x6   :  { %s758_s21 = smov 0   ;;  %s760_s22 = smov 0  }
   0x7 LB: > { %939 = sst [smem:[#allocation8_spill]] %s703_s20  ;;  %s458_s23 = sadd.s32 4294967295, %s711_s22   ;;  %s711_s22 = sphi %s760_s22, %s20_s22   ;;  %s707_s21 = sphi %s758_s21, %s954_s21   ;;  %s703_s20 = sphi %s756_s20, %s948_s20   ;;  %s699_s19 = sphi %s754_s19, %s953_s19   ;;  %s695_s18 = sphi %s752_s18, %s947_s18   ;;  %s691_s17 = sphi %s750_s17, %s952_s17   ;;  %s687_s16 = sphi %s748_s16, %s951_s16   ;;  %s683_s15 = sphi %s746_s15, %s950_s15  }
   0x8   : > { %s459_s24 = sadd.s32 4294967294, %s711_s22   ;;  %s29_s25 = sadd.s32 1, %s703_s20 }
   0x9   : > { %s32_s26 = sadd.s32 1, %s707_s21  ;;  %p30_p0 = scmp.ge.s32.totalorder %s29_s25, 4 }
   0xa   : > { %s41_s27 = sadd.s32 1, %s691_s17  ;;  %p48_p1 = scmp.ne.s32.totalorder %s691_s17, %s687_s16 }
   0xb   : > { %p49_p2 = scmp.eq.s32.totalorder %s711_s22, 0  ;;  %s956_s25 = smov (%p30_p0, %s29_s25), 0 }
   0xc   : > { %940 = sst [smem:[#allocation9_spill]] %s956_s25  ;;  %s958_s26 = smov (!%p30_p0, %s32_s26), %s707_s21 }
   0xd   : > { %s37_s28 = ssub.s32 %s703_s20, %s956_s25  ;;  %p799_p3 = por %p49_p2, %p48_p1 }
   0xe   : > { %p34_p4 = scmp.ge.s32.totalorder %s958_s26, 2  ;;  %p54_p5 = scmp.ne.s32.totalorder %s687_s16, %s683_s15 }
   0xf   : > { %p55_p6 = scmp.eq.s32.totalorder %s458_s23, 0  ;;  %p143_p7 = scmp.eq.s32.totalorder %s458_s23, 7 }
  0x10   : > { %s960_s26 = smov (%p34_p4, %s958_s26), 0  ;;  %p149_p10 = scmp.eq.s32.totalorder %s459_s24, 7 }
  0x11   : > { %942 = sst [smem:[#allocation10_spill]] %s960_s26  ;;  %p807_p8 = por %p55_p6, %p54_p5 }
  0x12   : > { %p811_p9 = por %p143_p7, %p48_p1  ;;  %s36_s6 = ssub.s32 %s707_s21, %s960_s26 }
  0x13   : > { %s38_s7 = sor.u32 %s37_s28, %s36_s6  ;;  %p817_p12 = por %p149_p10, %p54_p5 }
  0x14   : > { %p39_p11 = scmp.eq.s32.totalorder %s38_s7, 0  ;;  %p511_p13 = scmp.lt.s32.totalorder %s711_s22, 8 }
  0x15   : > { %s178_s9 = sand.u32 1, %s691_s17   ;;  %s463_s12 = sshll.u32 %s703_s20, 2 }
  0x16   : > { %s824_s10 = scalar_select %p39_p11, %s691_s17, %s41_s27  }
  0x17   : > { %s462_s11 = sshll.u32 %s178_s9, 5  ;;  %s464_s13 = sshll.u32 %s707_s21, 4 }
  0x18   : > { %s182_s14 = scalar_lea.vmem [#allocation2], %s462_s11  ;;  %s188_s25 = sadd.s32 %s464_s13, %s463_s12 }
  0x19   : > { %s191_s23 = sshll.u32 %s182_s14, 4  ;;  %s465_s26 = sshll.u32 %s188_s25, 7  ;;  %s192_s23 = int_to_ptr.vmem [resolvable:$true] %s191_s23 }
  0x1a   : > { %p830_p0 = pnand %p511_p13, %p799_p3  ;;  %s190_s7 = scalar_lea.hbm %s931_s0, %s465_s26 }
  0x1b   : > { %s179_s27 = scalar_lea.sflag [#allocation3], %s178_s9  ;;  %s600_s20 = scalar_lea.vmem %s192_s23, 512 }
  0x1c   : > { %p589_p1 = pneg %p830_p0  ;;  %p601_p2 = scmp.ne.s32.totalorder %s192_s23, %s600_s20 }
  0x1d   : > { %s713_s11 = smov [#allocation2]  }
  0x1e   : > { %p603_p4 = pnand %p601_p2, %p589_p1  ;;  %s605_s12 = sshll.u32 %s713_s11, 4  ;;  %s606_s12 = int_to_ptr.vmem [resolvable:$false] %s605_s12 }
  0x1f   : > { %s607_s25 = scalar_lea.vmem %s606_s12, 1024  ;;  %p608_p3 = scmp.lt.s32.totalorder %s192_s23, %s606_s12 }
  0x20   : > { %p604_p5 = pneg %p603_p4  ;;  %p609_p6 = scmp.lt.s32.totalorder %s607_s25, %s600_s20 }
  0x22   : > { %p610_p7 = por %p609_p6, %p608_p3 }
  0x24   : > { %p611_p10 = pnand %p610_p7, %p604_p5 }
  0x26   : > { %614 = shalt.err (!%p611_p10)
}
  0x27   : > { %s714_s29 = smov 128   ;;  %s715_s26 = smov 8  }
  0x28   : > { %506 = dma.hbm_to_vmem [thread:$0]  (!%p830_p0), %s190_s7, 512, %s192_s23, %s179_s27, %s714_s29, %s714_s29, %s715_s26  }
  0x29   : > { %p466_p11 = scmp.ge.s32.totalorder %s711_s22, 1  ;;  %p199_p13 = scmp.lt.s32.totalorder %s711_s22, 9 }
  0x2b   : > { %p200_p1 = pnand %p466_p11, %p199_p13 }
  0x2c   : > { %s844_s9 = sand.u32 (!%p200_p1), 1, %s687_s16  }
  0x2d   : > { %203 = sbr.rel (%p200_p1) target bundleno = 281 (0x119), region = 36  ;;  %s467_s20 = sshll.u32 (!%p200_p1), %s844_s9, 5 }
  0x2e   : > { %s206_s13 = scalar_lea.sflag (!%p200_p1), [#allocation3], %s844_s9  ;;  %s209_s14 = scalar_lea.vmem (!%p200_p1), [#allocation2], %s467_s20 }
  0x32   : > { %674 = dma.done.wait (%p807_p8), %s206_s13, 512  }
  0x33   : > { %676 = vsyncadd (%p807_p8), %s206_s13, 4294966784  ;;  %v716_v0 = vmov 0.0   ;;  %vm717_vm0 = vmmov 0   ;;  %v583_v1 = vld [vmem:[%s934_s3 + $0x18] sm:$0xff]   ;;  %v584_v2 = vld [vmem:[%s934_s3 + $0x10] sm:$0xff]   ;;  %vm302_vm1 = vcmask 523264  }
  0x34   : > { %487 = vmatprep.subr.bf16.mxu0 %v716_v0  ;;  %495 = vmatprep.mubr.msk.bf16.mxu0 %vm717_vm0, %v716_v0  ;;  %v237_v3 = vld [vmem:[%s209_s14] sm:$0xff]  ;;  %v238_v4 = vld [vmem:[%s209_s14 + $0x8] sm:$0xff]  ;;  %v239_v5 = vld [vmem:[%s209_s14 + $0x10] sm:$0xff]  ;;  %s477_s20 = sshll.u32 %s695_s18, 1  ;;  %s478_s13 = sshll.u32 %s699_s19, 3  ;;  %vm349_vm2 = vcmask 125952  }
  0x35   : > { %488 = vmatpush3.bf16.msra.mxu0 %v583_v1  ;;  %v240_v6 = vld [vmem:[%s209_s14 + $0x18] sm:$0xff]  ;;  %v469_v7 = vld [vmem:[%s932_s1] ss:$0 sm:$0xff]  ;;  %v585_v9 = vld [vmem:[%s934_s3 + $0x8] sm:$0xff]   ;;  %s468_s14 = sshll.u32 %s844_s9, 3  ;;  %s365_s23 = sadd.s32 %s478_s13, %s477_s20 }
  0x36   : > { %489 = vmatprep.subr.bf16.mxu0 %v716_v0  ;;  %v470_v8 = vld [vmem:[%s933_s2] ss:$0 sm:$0xff]  ;;  %v248_v10 = vmul.f32 %v469_v7, %v237_v3  ;;  %v249_v11 = vmul.f32 %v469_v7, %v238_v4  ;;  %v250_v12 = vmul.f32 %v469_v7, %v239_v5  ;;  %v251_v13 = vmul.f32 %v469_v7, %v240_v6  ;;  %s233_s24 = scalar_lea.vmem [#allocation5], %s468_s14  ;;  %s479_s6 = sshll.u32 %s365_s23, 6 }
  0x37   : > { %v586_v18 = vld [vmem:[%s934_s3] sm:$0xff]   ;;  %s368_s28 = sshll.u32 %s233_s24, 4  ;;  %s878_s30 = scalar_lea.hbm %s935_s4, %s479_s6  ;;  %s873_s28 = int_to_ptr.vmem [resolvable:$true] %s368_s28 }
  0x38   : > { %v259_v14 = vadd.f32 %v470_v8, %v248_v10  ;;  %v260_v15 = vadd.f32 %v470_v8, %v249_v11  ;;  %v261_v16 = vadd.f32 %v470_v8, %v250_v12  ;;  %v262_v17 = vadd.f32 %v470_v8, %v251_v13  ;;  %s353_s7 = scalar_lea.sflag [#allocation4], %s844_s9  ;;  %s615_s27 = scalar_lea.vmem %s873_s28, 128 }
  0x39   : > { %490 = vmatpush3.bf16.msra.mxu0 %v584_v2  ;;  %p616_p8 = scmp.ne.s32.totalorder %s873_s28, %s615_s27  ;;  %s718_s11 = smov [#allocation5]  }
  0x3a   : > { %491 = vmatprep.subr.bf16.mxu0 %v716_v0  ;;  %v263_v19 = vmax.f32 %v259_v14, 0.0  ;;  %v264_v20 = vmax.f32 %v260_v15, 0.0  ;;  %v265_v21 = vmax.f32 %v261_v16, 0.0  ;;  %v266_v22 = vmax.f32 %v262_v17, 0.0  ;;  %s619_s12 = sshll.u32 %s718_s11, 4  ;;  %s620_s12 = int_to_ptr.vmem [resolvable:$false] %s619_s12 }
  0x3b   : > { %p617_p0 = pnand %p616_p8, %p811_p9  ;;  %s621_s25 = scalar_lea.vmem %s620_s12, 256 }
  0x3c   : > { %v267_v23 = vadd.f32 %v264_v20, %v263_v19  ;;  %v268_v24 = vadd.f32 %v266_v22, %v265_v21  ;;  %p622_p4 = scmp.lt.s32.totalorder %s873_s28, %s620_s12  ;;  %p623_p5 = scmp.lt.s32.totalorder %s621_s25, %s615_s27 }
  0x3d   : > { %492 = vmatpush3.bf16.msra.mxu0 %v585_v9  ;;  %p618_p2 = pneg %p617_p0 }
  0x3e   : > { %493 = vmatprep.subr.bf16.mxu0 %v716_v0  ;;  %v269_v25 = vpack.c.bf16 %v268_v24, %v267_v23  ;;  %p624_p3 = por %p623_p5, %p622_p4 }
  0x40   : > { %p625_p6 = pnand %p624_p3, %p618_p2 }
  0x41   : > { %494 = vmatpush3.bf16.msra.mxu0 %v586_v18 }
  0x44   : > { %496 = vmatmul.mubr.msk.bf16.vlgmr.msra.gmra.mxu0 %vm302_vm1, %v269_v25 }
 0x104   : > { %v340_v26 = vpop.f32.mrf.mxu0 }
 0x105   : > { %v347_v27 = vpack.c.bf16 %v340_v26, %v340_v26 }
 0x106   : > { %v497_v28 = vpop.f32.mrf.mxu0 }
 0x107   : > { %350 = vst.msk [vmem:[%s233_s24] sm:$0xf] %vm349_vm2, %v347_v27 }
 0x108   : > { %v343_v29 = vpop.f32.mrf.mxu0 }
 0x109   : > { %v348_v30 = vpack.c.bf16 %v343_v29, %v343_v29 }
 0x10a   : > { %v498_v31 = vpop.f32.mrf.mxu0 }
 0x10b   : > { %351 = vst.msk [vmem:[%s233_s24 + $0x4] sm:$0xf] %vm349_vm2, %v348_v30 }
 0x10c   : > { %628 = shalt.err (!%p625_p6)
}
 0x10d   : > { %s629_s29 = scalar_lea.hbm %s878_s30, 128  ;;  %s633_s13 = scalar_lea.hbm %s935_s4, 1024 }
 0x10e   : > { %p630_p7 = scmp.ne.s32.totalorder %s878_s30, %s629_s29  ;;  %p634_p13 = scmp.lt.s32.totalorder %s878_s30, %s935_s4 }
 0x10f   : > { %p635_p1 = scmp.lt.s32.totalorder %s633_s13, %s629_s29 }
 0x110   : > { %p631_p10 = pnand %p630_p7, %p811_p9 }
 0x111   : > { %p636_p8 = por %p635_p1, %p634_p13 }
 0x112   : > { %p632_p11 = pneg %p631_p10 }
 0x114   : > { %p637_p0 = pnand %p636_p8, %p632_p11 }
 0x116   : > { %640 = shalt.err (!%p637_p0)
}
 0x117   : > { %s719_s24 = smov 64   ;;  %s720_s6 = smov 4  }
 0x118   : > { %501 = dma.vmem_to_hbm [thread:$0]  (%p811_p9), %s873_s28, 128, %s878_s30, %s353_s7, %s719_s24, %s719_s24, %s720_s6  }
 0x119 PF: > { %p512_p2 = scmp.ge.s32.totalorder %s711_s22, 2  ;;  %s383_s18 = sand.u32 1, %s683_s15  }
 0x11a   : > { %s384_s19 = scalar_lea.sflag [#allocation4], %s383_s18 }
 0x11b   : > { %p508_p4 = pnand %p512_p2, %p817_p12 }
 0x11d   : > { %p509_p5 = pneg %p508_p4 }
 0x11f   : > { %678 = dma.done.wait (%p509_p5), %s384_s19, 128  }
 0x120   : > { %680 = vsyncadd (%p509_p5), %s384_s19, 4294967168  ;;  %s20_s22 = sadd.s32 1, %s711_s22   ;;  %s947_s18 = sld [smem:[#allocation8_spill]] }
 0x121   : > { %p17_p3 = scmp.ge.s32.totalorder %s20_s22, 10   ;;  %s948_s20 = sld [smem:[#allocation9_spill]] }
 0x122   : > { %s949_s5 = sld [smem:[#allocation10_spill]]  ;;  %s950_s15 = smov %s687_s16 }
 0x123   : > { %s951_s16 = smov %s691_s17  ;;  %s952_s17 = smov %s824_s10 }
 0x124   : > { %s953_s19 = smov %s707_s21  ;;  %19 = sbr.rel (!%p17_p3) target bundleno = 7 (0x7), region = 81 }
 0x128   : > { %s954_s21 = smov %s949_s5 }
 0x129   :  { %389 = vsyncpa [#allocation3], 1 }
 0x12a   :  { %391 = vsyncpa [#allocation3 + $0x1], 1 }
 0x12b   :  { %392 = vsyncpa [#allocation4], 1 }
 0x12c   :  { %394 = vsyncpa [#allocation4 + $0x1], 1 }

</bundles_post_ra>
